<compile_context>
chip_gen: v7x
topology: tpu7x:2x2x1
jax: 0.10.0
libtpu: 0.0.40
codegen_flags: <defaults>
</compile_context>

<pallas_src>
import jax
import jax.numpy as jnp
import numpy as np
from jax.experimental import pallas as pl
from jax.experimental.pallas import tpu as pltpu

_LANE = 128
_SUBLANE = 8
_MIB = 1024 * 1024


def _round_up(x, m):
    return ((x + m - 1) // m) * m


def _pad2d(a, rows, cols):
    pr = rows - a.shape[0]
    pc = cols - a.shape[1]
    if pr == 0 and pc == 0:
        return a
    return jnp.pad(a, ((0, pr), (0, pc)))


def _vmem_budget_bytes():
    """~85% of physical per-core VMEM (headroom for Mosaic internal scratch / spills)."""
    cap = 64 * _MIB
    try:
        info = pltpu.get_tpu_info()
        cap = int(getattr(info, "vmem_capacity_bytes", cap) or cap)
    except Exception:  # query unavailable (e.g. interpret mode) -> v7x-conservative default
        pass
    cap = max(cap, 32 * _MIB)
    return int(cap * 0.85)


# ----------------------------------------------------------------------------- kernels

def _mlp_kernel(x_ref, w1_ref, b1_ref, w2_ref, b2_ref, o_ref, h_ref):
    # x_ref : (TM, D_in_p)  f32 row tile
    # w1_ref: (D_in_p, H_p) resident, compute dtype (bf16 by default)
    # b1_ref: (1, H_p)      f32
    # w2_ref: (H_p, TN)     output-column tile, compute dtype
    # b2_ref: (1, TN)       f32
    # o_ref : (TM, TN)      f32
    # h_ref : (TM, H_p)     VMEM scratch (compute dtype), reused across column tiles.
    @pl.when(pl.program_id(1) == 0)
    def _():
        x = x_ref[...].astype(w1_ref.dtype)
        h = jnp.dot(x, w1_ref[...], preferred_element_type=jnp.float32) + b1_ref[...]
        h = h * jax.nn.sigmoid(h)            # SiLU; exp runs on the EUP (free slot)
        h_ref[...] = h.astype(h_ref.dtype)

    y = jnp.dot(h_ref[...], w2_ref[...], preferred_element_type=jnp.float32) + b2_ref[...]
    o_ref[...] = y.astype(o_ref.dtype)


def _linear_kernel(x_ref, w_ref, b_ref, o_ref):
    # hidden_dim == -1 case: single Linear.
    x = x_ref[...].astype(w_ref.dtype)
    y = jnp.dot(x, w_ref[...], preferred_element_type=jnp.float32) + b_ref[...]
    o_ref[...] = y.astype(o_ref.dtype)


# ------------------------------------------------------------------ pallas_call builders

def _run_mlp(x2d, w1, b1, w2, b2, *, tile_m, tile_n):
    M, d_in = x2d.shape
    h = w1.shape[1]
    d_out = w2.shape[1]
    n_m, n_n = M // tile_m, d_out // tile_n
    wb = w1.dtype.itemsize

    # Truthful cost estimate: first matmul/SiLU run once per row (scratch reuse);
    # W2 is re-streamed once per row tile when it is column-tiled.
    flops = 2 * M * d_in * h + 2 * M * h * d_out
    transcendentals = M * h
    w2_passes = n_m if n_n > 1 else 1
    bytes_accessed = (4 * M * d_in + wb * d_in * h + wb * w2_passes * h * d_out
                      + 4 * (h + d_out) + 4 * M * d_out)

    footprint = (
        2 * tile_m * d_in * 4                      # x tile, double-buffered (f32)
        + 2 * tile_m * tile_n * 4                  # out tile, double-buffered (f32)
        + 2 * (d_in * h * wb + 8 * h * 4)          # W1 / b1 (conservative: 2 buffers)
        + 2 * (h * tile_n * wb + 8 * tile_n * 4)   # W2 / b2
        + tile_m * h * (wb + 4)                    # h scratch + f32 pre-cast temp
        + tile_m * tile_n * 4)                     # f32 y temp
    vmem_limit = min(_vmem_budget_bytes(), max(32 * _MIB, int(footprint * 1.25)))

    return pl.pallas_call(
        _mlp_kernel,
        out_shape=jax.ShapeDtypeStruct((M, d_out), x2d.dtype),
        grid_spec=pltpu.PrefetchScalarGridSpec(
            num_scalar_prefetch=0,
            grid=(n_m, n_n),
            in_specs=[
                pl.BlockSpec((tile_m, d_in), lambda i, j: (i, 0)),
                pl.BlockSpec((d_in, h), lambda i, j: (0, 0)),
                pl.BlockSpec((1, h), lambda i, j: (0, 0)),
                pl.BlockSpec((h, tile_n), lambda i, j: (0, j)),
                pl.BlockSpec((1, tile_n), lambda i, j: (0, j)),
            ],
            out_specs=pl.BlockSpec((tile_m, tile_n), lambda i, j: (i, j)),
            scratch_shapes=[pltpu.VMEM((tile_m, h), w1.dtype)],
        ),
        compiler_params=pltpu.CompilerParams(
            # j must be sequential ("arbitrary"): the h scratch is reused across it.
            dimension_semantics=("parallel", "arbitrary"),
            vmem_limit_bytes=int(vmem_limit)),
        cost_estimate=pl.CostEstimate(
            flops=int(flops), transcendentals=int(transcendentals),
            bytes_accessed=int(bytes_accessed)),
    )(x2d, w1, b1, w2, b2)


def _run_linear(x2d, w, b, *, tile_m, tile_n):
    M, d_in = x2d.shape
    d_out = w.shape[1]
    n_m, n_n = M // tile_m, d_out // tile_n
    wb = w.dtype.itemsize

    flops = 2 * M * d_in * d_out
    w_passes = n_m if n_n > 1 else 1
    bytes_accessed = 4 * M * d_in + wb * w_passes * d_in * d_out + 4 * d_out + 4 * M * d_out

    footprint = (
        2 * tile_m * d_in * 4
        + 2 * tile_m * tile_n * 4
        + 2 * (d_in * tile_n * wb + 8 * tile_n * 4)
        + tile_m * tile_n * 4)
    vmem_limit = min(_vmem_budget_bytes(), max(32 * _MIB, int(footprint * 1.25)))

    return pl.pallas_call(
        _linear_kernel,
        out_shape=jax.ShapeDtypeStruct((M, d_out), x2d.dtype),
        grid_spec=pltpu.PrefetchScalarGridSpec(
            num_scalar_prefetch=0,
            grid=(n_m, n_n),
            in_specs=[
                pl.BlockSpec((tile_m, d_in), lambda i, j: (i, 0)),
                pl.BlockSpec((d_in, tile_n), lambda i, j: (0, j)),
                pl.BlockSpec((1, tile_n), lambda i, j: (0, j)),
            ],
            out_specs=pl.BlockSpec((tile_m, tile_n), lambda i, j: (i, j)),
        ),
        compiler_params=pltpu.CompilerParams(
            dimension_semantics=("parallel", "parallel"),
            vmem_limit_bytes=int(vmem_limit)),
        cost_estimate=pl.CostEstimate(
            flops=int(flops), transcendentals=0,
            bytes_accessed=int(bytes_accessed)),
    )(x2d, w, b)


# ----------------------------------------------------------------------------- module

class AudioProjectorPallas:
    """JAX/Pallas port of AudioProjector (forward pass only)."""

    def __init__(self, input_dim, output_dim, hidden_dim, *, bias=True,
                 zero_init=False, key=None, dtype=jnp.float32,
                 compute_dtype=jnp.bfloat16):
        # TODO(synk): plumb bias=False (the reference module allows it); not needed here.
        assert bias, "bias=False not exercised by this port"
        if key is None:
            key = jax.random.PRNGKey(0)
        self.input_dim = input_dim
        self.output_dim = output_dim
        self.hidden_dim = hidden_dim
        self.compute_dtype = compute_dtype

        wb = jnp.dtype(compute_dtype).itemsize
        budget = _vmem_budget_bytes()
        tm_plan = 512                                     # worst-case row tile for planning
        d_in_p = _round_up(input_dim, _LANE)
        d_out_128 = _round_up(output_dim, _LANE)
        self._d_in_p = d_in_p

        if hidden_dim == -1:
            fixed = 2 * tm_plan * d_in_p * 4
            def tot(tn):
                return fixed + 2 * (d_in_p * tn * wb + 8 * tn * 4) + 3 * tm_plan * tn * 4
            self._tile_n = self._pick_tile_n(d_out_128, tot, budget)
            self._d_out_p = _round_up(output_dim, self._tile_n)

            k0, k1 = jax.random.split(key, 2)
            lim = 1.0 / np.sqrt(input_dim)
            # Stored transposed: (in, out). PyTorch Linear computes x @ W.T + b.
            w = jax.random.uniform(k0, (input_dim, output_dim), dtype, -lim, lim)
            b = jax.random.uniform(k1, (1, output_dim), dtype, -lim, lim)
            if zero_init:
                w = jnp.zeros_like(w)
                b = jnp.zeros_like(b)
            self.w, self.b = w, b
            # Pad once at init (zero rows/cols contribute nothing); weights in compute dtype.
            self._w_p = _pad2d(w, d_in_p, self._d_out_p).astype(compute_dtype)
            self._b_p = _pad2d(b, 1, self._d_out_p)               # bias stays f32
        else:
            h_p = _round_up(hidden_dim, _LANE)
            self._h_p = h_p
            fixed = (2 * (d_in_p * h_p * wb + 8 * h_p * 4)        # resident W1 / b1
                     + 2 * tm_plan * d_in_p * 4                   # x tiles
                     + tm_plan * h_p * (wb + 4))                  # h scratch + f32 temp
            def tot(tn):
                return fixed + 2 * (h_p * tn * wb + 8 * tn * 4) + 3 * tm_plan * tn * 4
            self._tile_n = self._pick_tile_n(d_out_128, tot, budget)
            self._d_out_p = _round_up(output_dim, self._tile_n)

            k0, k1, k2, k3 = jax.random.split(key, 4)
            lim1 = 1.0 / np.sqrt(input_dim)
            lim2 = 1.0 / np.sqrt(hidden_dim)
            w1 = jax.random.uniform(k0, (input_dim, hidden_dim), dtype, -lim1, lim1)
            b1 = jax.random.uniform(k1, (1, hidden_dim), dtype, -lim1, lim1)
            w2 = jax.random.uniform(k2, (hidden_dim, output_dim), dtype, -lim2, lim2)
            b2 = jax.random.uniform(k3, (1, output_dim), dtype, -lim2, lim2)
            if zero_init:
                w2 = jnp.zeros_like(w2)
                b2 = jnp.zeros_like(b2)
            self.w1, self.b1, self.w2, self.b2 = w1, b1, w2, b2
            self._w1_p = _pad2d(w1, d_in_p, h_p).astype(compute_dtype)
            self._b1_p = _pad2d(b1, 1, h_p)
            self._w2_p = _pad2d(w2, h_p, self._d_out_p).astype(compute_dtype)
            self._b2_p = _pad2d(b2, 1, self._d_out_p)

    @staticmethod
    def _pick_tile_n(d_out_128, tot_fn, budget):
        """Largest column tile whose VMEM footprint fits the generation's budget."""
        if tot_fn(d_out_128) <= budget:
            return d_out_128              # W2 fully resident, single output-column tile
        for cand in (1024, 512, 256):
            if tot_fn(cand) <= budget:
                return cand
        # TODO(synk): if even a 128-wide column tile overshoots (W1 alone too large),
        #             switch to H (K) grid tiling with an f32 accumulator scratch.
        return _LANE

    def __call__(self, audio_embed, num_frames, *, tile_m=None, tile_n=None):
        B, T_audio, D_in = audio_embed.shape
        assert D_in == self.input_dim

        x = audio_embed
        T_eff = T_audio
        # Nearest resample commutes with the row-wise projection: when DOWNSAMPLING,
        # gather first and project only the surviving rows.
        # TODO(synk): fuse this gather into the kernel via scalar-prefetched row indices.
        if num_frames < T_audio:
            idx = (jnp.arange(num_frames) * T_audio) // num_frames
            x = jnp.take(x, idx, axis=1)
            T_eff = num_frames

        M = B * T_eff
        M8 = _round_up(M, _SUBLANE)
        if tile_m is None:
            if M8 <= 512:
                tile_m = M8               # whole row range in one tile
            elif M8 < 1024:
                tile_m = 256              # keep >= 2 row tiles for megacore sharding
            else:
                tile_m = 512              # ~85% of HBM roofline per measured tiling data
        tile_m = _round_up(tile_m, _SUBLANE)
        if tile_n is None:
            tile_n = self._tile_n
        assert tile_n % _LANE == 0 and self._d_out_p % tile_n == 0, (self._d_out_p, tile_n)

        M_pad = _round_up(M, tile_m)
        # Single pad op; no-op (no HBM copy) when dims are already aligned.
        x2d = _pad2d(x.reshape(M, D_in), M_pad, self._d_in_p)

        if self.hidden_dim == -1:
            y2d = _run_linear(x2d, self._w_p, self._b_p, tile_m=tile_m, tile_n=tile_n)
        else:
            y2d = _run_mlp(x2d, self._w1_p, self._b1_p, self._w2_p, self._b2_p,
                           tile_m=tile_m, tile_n=tile_n)

        projected = y2d[:M, :self.output_dim].reshape(B, T_eff, self.output_dim)

        if num_frames > T_audio:
            # Upsampling: F.interpolate(mode='nearest'): out[i] = in[(i * T_in) // T_out]
            idx = (jnp.arange(num_frames) * T_audio) // num_frames
            projected = jnp.take(projected, idx, axis=1)
        return projected


# ---------------------------------------------------------------------------- reference

def _reference_forward(model, audio_embed, num_frames):
    """Pure-JAX f32 reference (project first, then nearest-resample, like PyTorch)."""
    hp = jax.lax.Precision.HIGHEST
    if model.hidden_dim == -1:
        y = jnp.matmul(audio_embed, model.w, precision=hp) + model.b[0]
    else:
        h = jnp.matmul(audio_embed, model.w1, precision=hp) + model.b1[0]
        h = h * jax.nn.sigmoid(h)
        y = jnp.matmul(h, model.w2, precision=hp) + model.b2[0]
    B, T_audio, _ = audio_embed.shape
    if T_audio != num_frames:
        idx = (jnp.arange(num_frames) * T_audio) // num_frames
        y = jnp.take(y, idx, axis=1)
    return y


if __name__ == "__main__":
    key = jax.random.PRNGKey(0)
    k1, k2, k3, k4, kx1, kx2, kx3, kx4 = jax.random.split(key, 8)

    # Case 1: MLP path (default bf16 compute), upsampling (gather after projection).
    B, T_audio, D_in, H, D_out = 2, 8, 32, 64, 48
    num_frames = 12
    model = AudioProjectorPallas(D_in, D_out, H, key=k1)
    x = jax.random.normal(kx1, (B, T_audio, D_in), jnp.float32)
    out = jax.block_until_ready(model(x, num_frames))
    assert out.shape == (B, num_frames, D_out), out.shape
    np.testing.assert_allclose(np.asarray(out),
                               np.asarray(_reference_forward(model, x, num_frames)),
                               rtol=2e-2, atol=2e-2)

    # Case 2: bf16 MLP, non-multiple-of-128 dims, downsampling (gather before projection),
    # and two output-column tiles (tile_n=128, padded D_out=256) -> exercises the
    # scratch-h reuse + "arbitrary" column axis.
    B2, T2, Din2, H2, Dout2, nf2 = 2, 16, 200, 300, 200, 10
    model2 = AudioProjectorPallas(Din2, Dout2, H2, key=k2)
    x2 = jax.random.normal(kx2, (B2, T2, Din2), jnp.float32)
    out2 = jax.block_until_ready(model2(x2, nf2, tile_n=128))
    assert out2.shape == (B2, nf2, Dout2), out2.shape
    np.testing.assert_allclose(np.asarray(out2),
                               np.asarray(_reference_forward(model2, x2, nf2)),
                               rtol=2e-2, atol=2e-2)

    # Case 3: hidden_dim == -1 (single Linear), bf16 compute, no resampling.
    model3 = AudioProjectorPallas(32, 48, -1, key=k3)
    x3 = jax.random.normal(kx3, (2, 8, 32), jnp.float32)
    out3 = jax.block_until_ready(model3(x3, 8))
    assert out3.shape == (2, 8, 48), out3.shape
    np.testing.assert_allclose(np.asarray(out3),
                               np.asarray(_reference_forward(model3, x3, 8)),
                               rtol=2e-2, atol=2e-2)

    # Case 4: exact f32 compute path, tight tolerance against the reference.
    model4 = AudioProjectorPallas(D_in, D_out, H, key=k4, compute_dtype=jnp.float32)
    x4 = jax.random.normal(kx4, (B, T_audio, D_in), jnp.float32)
    out4 = jax.block_until_ready(model4(x4, T_audio))
    assert out4.shape == (B, T_audio, D_out), out4.shape
    np.testing.assert_allclose(np.asarray(out4),
                               np.asarray(_reference_forward(model4, x4, T_audio)),
                               rtol=1e-5, atol=1e-5)

    print("KERNEL_OK")
</pallas_src>

<mosaic_0001>
module attributes {stable_mosaic.version = 11 : i64} {
  func.func @_mlp_kernel(%arg0: i32, %arg1: i32, %arg2: memref<16x128xf32, #tpu.memory_space<vmem>>, %arg3: memref<128x128xbf16, #tpu.memory_space<vmem>>, %arg4: memref<1x128xf32, #tpu.memory_space<vmem>>, %arg5: memref<128x128xbf16, #tpu.memory_space<vmem>>, %arg6: memref<1x128xf32, #tpu.memory_space<vmem>>, %arg7: memref<16x128xf32, #tpu.memory_space<vmem>>, %arg8: memref<16x128xbf16, #tpu.memory_space<vmem>>) attributes {dimension_semantics = [#tpu.dimension_semantics<parallel>, #tpu.dimension_semantics<arbitrary>], iteration_bounds = array<i64: 1, 1>, scalar_prefetch = 0 : i64, scratch_operands = 1 : i64, tpu.core_type = #tpu.core_type<tc>, window_params = [{transform_indices = @transform_0, window_bounds = array<i64: 16, 128>}, {pipeline_mode = #tpu.pipeline_mode<synchronous>, transform_indices = @transform_1, window_bounds = array<i64: 128, 128>}, {pipeline_mode = #tpu.pipeline_mode<synchronous>, transform_indices = @transform_2, window_bounds = array<i64: 1, 128>}, {transform_indices = @transform_3, window_bounds = array<i64: 128, 128>}, {transform_indices = @transform_4, window_bounds = array<i64: 1, 128>}, {transform_indices = @transform_5, window_bounds = array<i64: 16, 128>}]} {
    %c0_i32 = arith.constant 0 : i32
    %0 = arith.cmpi eq, %arg1, %c0_i32 : i32
    %1 = arith.extui %0 : i1 to i32
    %c0_i32_0 = arith.constant 0 : i32
    %2 = arith.cmpi ne, %1, %c0_i32_0 : i32
    scf.if %2 {
      %c0_8 = arith.constant 0 : index
      %c0_9 = arith.constant 0 : index
      %10 = vector.load %arg2[%c0_8, %c0_9] : memref<16x128xf32, #tpu.memory_space<vmem>>, vector<16x128xf32>
      %11 = arith.truncf %10 : vector<16x128xf32> to vector<16x128xbf16>
      %c0_10 = arith.constant 0 : index
      %c0_11 = arith.constant 0 : index
      %12 = vector.load %arg3[%c0_10, %c0_11] : memref<128x128xbf16, #tpu.memory_space<vmem>>, vector<128x128xbf16>
      %cst_12 = arith.constant dense<0.000000e+00> : vector<16x128xf32>
      %13 = tpu.matmul %11, %12, %cst_12 {dimension_numbers = #tpu.dot_dimension_numbers<[1], [0], [0], [1], [0, 0, 1, 1], [], []>} : vector<16x128xbf16>, vector<128x128xbf16>, vector<16x128xf32> -> vector<16x128xf32>
      %c0_13 = arith.constant 0 : index
      %c0_14 = arith.constant 0 : index
      %14 = vector.load %arg4[%c0_13, %c0_14] : memref<1x128xf32, #tpu.memory_space<vmem>>, vector<1x128xf32>
      %15 = vector.broadcast %14 : vector<1x128xf32> to vector<16x128xf32>
      %16 = arith.addf %13, %15 : vector<16x128xf32>
      %17 = arith.negf %16 : vector<16x128xf32>
      %18 = math.exp %17 : vector<16x128xf32>
      %cst_15 = arith.constant 1.000000e+00 : f32
      %19 = vector.broadcast %cst_15 : f32 to vector<16x128xf32>
      %20 = arith.addf %19, %18 : vector<16x128xf32>
      %21 = arith.divf %19, %20 : vector<16x128xf32>
      %22 = arith.mulf %16, %21 : vector<16x128xf32>
      %23 = arith.truncf %22 : vector<16x128xf32> to vector<16x128xbf16>
      %c0_16 = arith.constant 0 : index
      %c0_17 = arith.constant 0 : index
      %24 = vector.load %arg8[%c0_16, %c0_17] : memref<16x128xbf16, #tpu.memory_space<vmem>>, vector<16x128xbf16>
      tpu.vector_store %arg8[%c0_16, %c0_17], %23 {strides = array<i32>} : memref<16x128xbf16, #tpu.memory_space<vmem>>, vector<16x128xbf16>,
    } else {
    }
    %c0 = arith.constant 0 : index
    %c0_1 = arith.constant 0 : index
    %3 = vector.load %arg8[%c0, %c0_1] : memref<16x128xbf16, #tpu.memory_space<vmem>>, vector<16x128xbf16>
    %c0_2 = arith.constant 0 : index
    %c0_3 = arith.constant 0 : index
    %4 = vector.load %arg5[%c0_2, %c0_3] : memref<128x128xbf16, #tpu.memory_space<vmem>>, vector<128x128xbf16>
    %cst = arith.constant dense<0.000000e+00> : vector<16x128xf32>
    %5 = tpu.matmul %3, %4, %cst {dimension_numbers = #tpu.dot_dimension_numbers<[1], [0], [0], [1], [0, 0, 1, 1], [], []>} : vector<16x128xbf16>, vector<128x128xbf16>, vector<16x128xf32> -> vector<16x128xf32>
    %c0_4 = arith.constant 0 : index
    %c0_5 = arith.constant 0 : index
    %6 = vector.load %arg6[%c0_4, %c0_5] : memref<1x128xf32, #tpu.memory_space<vmem>>, vector<1x128xf32>
    %7 = vector.broadcast %6 : vector<1x128xf32> to vector<16x128xf32>
    %8 = arith.addf %5, %7 : vector<16x128xf32>
    %c0_6 = arith.constant 0 : index
    %c0_7 = arith.constant 0 : index
    %9 = vector.load %arg7[%c0_6, %c0_7] : memref<16x128xf32, #tpu.memory_space<vmem>>, vector<16x128xf32>
    tpu.vector_store %arg7[%c0_6, %c0_7], %8 {strides = array<i32>} : memref<16x128xf32, #tpu.memory_space<vmem>>, vector<16x128xf32>,
    return
  }
  func.func @transform_0(%arg0: i32, %arg1: i32) -> (i32, i32) {
    %c0_i32 = arith.constant 0 : i32
    %c0_i32_0 = arith.constant 0 : i32
    return %arg0, %c0_i32 : i32, i32
  }
  func.func @transform_1(%arg0: i32, %arg1: i32) -> (i32, i32) {
    %c0_i32 = arith.constant 0 : i32
    %c0_i32_0 = arith.constant 0 : i32
    %c0_i32_1 = arith.constant 0 : i32
    return %c0_i32, %c0_i32_0 : i32, i32
  }
  func.func @transform_2(%arg0: i32, %arg1: i32) -> (i32, i32) {
    %c0_i32 = arith.constant 0 : i32
    %c0_i32_0 = arith.constant 0 : i32
    %c0_i32_1 = arith.constant 0 : i32
    return %c0_i32, %c0_i32_0 : i32, i32
  }
  func.func @transform_3(%arg0: i32, %arg1: i32) -> (i32, i32) {
    %c0_i32 = arith.constant 0 : i32
    %c0_i32_0 = arith.constant 0 : i32
    return %c0_i32, %arg1 : i32, i32
  }
  func.func @transform_4(%arg0: i32, %arg1: i32) -> (i32, i32) {
    %c0_i32 = arith.constant 0 : i32
    %c0_i32_0 = arith.constant 0 : i32
    return %c0_i32, %arg1 : i32, i32
  }
  func.func @transform_5(%arg0: i32, %arg1: i32) -> (i32, i32) {
    %c0_i32 = arith.constant 0 : i32
    return %arg0, %arg1 : i32, i32
  }
}

</mosaic_0001>

<bundles_post_ra>
// kernel: tpu_custom_call.1
= control target key start
LH: loop header
LB: loop body
LE: loop exit
PB: predicated region body
PF: predicated region fallthrough
CT: control target
= control target key end

     0   :  { %10 = vsyncpa [#allocation4], 0  ;;  %s643_s0 = inlined_call_operand.hbm [shape: f32[16,128], index: 0, kind: input, shape index: {}]   ;;  %s644_s1 = inlined_call_operand.hbm [shape: bf16[128,128], index: 1, kind: input, shape index: {}]   ;;  %s645_s2 = inlined_call_operand.vmem [shape: f32[1,128], index: 2, kind: input, shape index: {}]   ;;  %s646_s3 = inlined_call_operand.hbm [shape: bf16[128,128], index: 3, kind: input, shape index: {}]   ;;  %s647_s4 = inlined_call_operand.vmem [shape: f32[1,128], index: 4, kind: input, shape index: {}]   ;;  %s648_s5 = inlined_call_operand.hbm [shape: f32[16,128], index: 5, kind: output, shape index: {}]  }
   0x1   :  { %11 = vsyncpa [#allocation7], 0 }
   0x2   :  { %12 = vsyncpa [#allocation5], 0  ;;  %s537_s18 = smov [#allocation6]   ;;  %s443_s22 = scalar_lea.hbm %s644_s1, 1024 }
   0x3   :  { %s30_s19 = sshll.u32 %s537_s18, 4  ;;  %p444_p0 = scmp.ne.s32.totalorder %s644_s1, %s443_s22  ;;  %s31_s19 = int_to_ptr.vmem [resolvable:$true] %s30_s19 }
   0x4   :  { %p447_p1 = scmp.lt.u32.totalorder %s443_s22, %s644_s1 }
   0x6   :  { %p449_p2 = pnand %p447_p1, %p444_p0 }
   0x8   :  { %452 = shalt.err (!%p449_p2)
}
   0x9   :  { %s453_s27 = scalar_lea.vmem %s31_s19, 1024  ;;  %p458_p4 = scmp.lt.s32.totalorder %s31_s19, %s31_s19 }
   0xa   :  { %p454_p3 = scmp.ne.s32.totalorder %s31_s19, %s453_s27  ;;  %p459_p5 = scmp.lt.s32.totalorder %s453_s27, %s453_s27 }
   0xc   :  { %p460_p6 = por %p459_p5, %p458_p4 }
   0xe   :  { %p461_p7 = pnand %p460_p6, %p454_p3 }
  0x10   :  { %464 = shalt.err (!%p461_p7)
}
  0x11   :  { %s538_s28 = smov 64   ;;  %s539_s29 = smov 4  }
  0x12   :  { %36 = dma.hbm_to_vmem [thread:$0]  %s644_s1, 1024, %s31_s19, [#allocation7], %s538_s28, %s538_s28, %s539_s29  }
  0x13   :  { %s540_s7 = smov [#allocation3]   ;;  %s465_s11 = scalar_lea.hbm %s643_s0, 256 }
  0x14   :  { %s18_s8 = sshll.u32 %s540_s7, 4  ;;  %p466_p8 = scmp.ne.s32.totalorder %s643_s0, %s465_s11  ;;  %s19_s8 = int_to_ptr.vmem [resolvable:$true] %s18_s8 }
  0x15   :  { %p469_p9 = scmp.lt.u32.totalorder %s465_s11, %s643_s0 }
  0x17   :  { %p471_p10 = pnand %p469_p9, %p466_p8 }
  0x19   :  { %474 = shalt.err (!%p471_p10)
}
  0x1a   :  { %s475_s16 = scalar_lea.vmem %s19_s8, 256  ;;  %p480_p12 = scmp.lt.s32.totalorder %s19_s8, %s19_s8 }
  0x1b   :  { %p476_p11 = scmp.ne.s32.totalorder %s19_s8, %s475_s16  ;;  %p481_p13 = scmp.lt.s32.totalorder %s475_s16, %s475_s16 }
  0x1d   :  { %p482_p0 = por %p481_p13, %p480_p12 }
  0x1f   :  { %p483_p1 = pnand %p482_p0, %p476_p11 }
  0x21   :  { %486 = shalt.err (!%p483_p1)
}
  0x22   :  { %s541_s1 = smov 128   ;;  %s542_s17 = smov 8  }
  0x23   :  { %24 = dma.hbm_to_vmem [thread:$0]  %s643_s0, 256, %s19_s8, [#allocation4], %s541_s1, %s541_s1, %s542_s17  }
  0x24   :  { %s543_s20 = smov [#allocation8]   ;;  %s487_s24 = scalar_lea.hbm %s646_s3, 1024 }
  0x25   :  { %s44_s21 = sshll.u32 %s543_s20, 4  ;;  %p488_p2 = scmp.ne.s32.totalorder %s646_s3, %s487_s24  ;;  %s45_s21 = int_to_ptr.vmem [resolvable:$true] %s44_s21 }
  0x26   :  { %p491_p3 = scmp.lt.u32.totalorder %s487_s24, %s646_s3 }
  0x28   :  { %p493_p4 = pnand %p491_p3, %p488_p2 }
  0x2a   :  { %496 = shalt.err (!%p493_p4)
}
  0x2b   :  { %s497_s6 = scalar_lea.vmem %s45_s21, 1024  ;;  %p502_p6 = scmp.lt.s32.totalorder %s45_s21, %s45_s21 }
  0x2c   :  { %p498_p5 = scmp.ne.s32.totalorder %s45_s21, %s497_s6  ;;  %p503_p7 = scmp.lt.s32.totalorder %s497_s6, %s497_s6 }
  0x2e   :  { %p504_p8 = por %p503_p7, %p502_p6 }
  0x30   :  { %p505_p9 = pnand %p504_p8, %p498_p5 }
  0x32   :  { %508 = shalt.err (!%p505_p9)
}
  0x33   :  { %50 = dma.hbm_to_vmem [thread:$0]  %s646_s3, 1024, %s45_s21, [#allocation7], %s538_s28, %s538_s28, %s539_s29  }
  0x34   :  { %531 = dma.done.wait [#allocation4], 256  }
  0x35   :  { %532 = vsyncadd [#allocation4], 4294967040 }
  0x36   :  { %533 = dma.done.wait [#allocation7], 2048  }
  0x37   :  { %534 = vsyncadd [#allocation7], 4294965248  ;;  %v544_v0 = vmov 0.0   ;;  %vm545_vm0 = vmmov 0   ;;  %v419_v1 = vld [vmem:[#allocation6] sm:$0xff]   ;;  %v420_v2 = vld [vmem:[#allocation6 + $0x8] sm:$0xff]  }
  0x38   :  { %369 = vmatprep.subr.bf16.mxu0 %v544_v0  ;;  %385 = vmatprep.mubr.msk.bf16.mxu0 %vm545_vm0, %v544_v0  ;;  %v421_v3 = vld [vmem:[#allocation6 + $0x10] sm:$0xff]   ;;  %v422_v4 = vld [vmem:[#allocation6 + $0x18] sm:$0xff]   ;;  %v423_v5 = vld [vmem:[#allocation6 + $0x20] sm:$0xff]   ;;  %s546_s8 = smov [#allocation9]  }
  0x39   :  { %389 = vmatprep.subr.bf16.mxu1 %v544_v0  ;;  %405 = vmatprep.mubr.msk.bf16.mxu1 %vm545_vm0, %v544_v0  ;;  %v424_v6 = vld [vmem:[#allocation6 + $0x28] sm:$0xff]   ;;  %v425_v7 = vld [vmem:[#allocation6 + $0x30] sm:$0xff]   ;;  %v426_v8 = vld [vmem:[#allocation6 + $0x38] sm:$0xff]   ;;  %s318_s9 = sshll.u32 %s546_s8, 4  ;;  %s319_s9 = int_to_ptr.vmem [resolvable:$true] %s318_s9 }
  0x3a   :  { %370 = vmatpush3.bf16.msra.mxu0 %v419_v1  ;;  %v67_v9 = vld [vmem:[#allocation3] sm:$0xff]  ;;  %v68_v10 = vld [vmem:[#allocation3 + $0x8] sm:$0xff]  ;;  %v427_v12 = vld [vmem:[#allocation8] sm:$0xff]   ;;  %s509_s10 = scalar_lea.vmem %s319_s9, 256  ;;  %p514_p11 = scmp.lt.s32.totalorder %s319_s9, %s319_s9 }
  0x3b   :  { %371 = vmatprep.subr.bf16.mxu0 %v544_v0  ;;  %v69_v11 = vpack.c.bf16 %v68_v10, %v67_v9  ;;  %390 = vmatpush3.bf16.msra.mxu1 %v427_v12  ;;  %v428_v13 = vld [vmem:[#allocation8 + $0x8] sm:$0xff]   ;;  %v429_v14 = vld [vmem:[#allocation8 + $0x10] sm:$0xff]   ;;  %v430_v15 = vld [vmem:[#allocation8 + $0x18] sm:$0xff]   ;;  %p510_p10 = scmp.ne.s32.totalorder %s319_s9, %s509_s10  ;;  %p515_p12 = scmp.lt.s32.totalorder %s509_s10, %s509_s10 }
  0x3c   :  { %391 = vmatprep.subr.bf16.mxu1 %v544_v0  ;;  %v431_v16 = vld [vmem:[#allocation8 + $0x20] sm:$0xff]   ;;  %v432_v17 = vld [vmem:[#allocation8 + $0x28] sm:$0xff]   ;;  %v433_v18 = vld [vmem:[#allocation8 + $0x30] sm:$0xff]  }
  0x3d   :  { %v434_v19 = vld [vmem:[#allocation8 + $0x38] sm:$0xff]   ;;  %v331_v20 = vld [vmem:[%s645_s2] ss:$0 sm:$0xff]  ;;  %p516_p13 = por %p515_p12, %p514_p11 }
  0x3e   :  { %372 = vmatpush3.bf16.msra.mxu0 %v420_v2  ;;  %v342_v38 = vld [vmem:[%s647_s4] ss:$0 sm:$0xff] }
  0x3f   :  { %373 = vmatprep.subr.bf16.mxu0 %v544_v0  ;;  %392 = vmatpush3.bf16.msra.mxu1 %v428_v13  ;;  %p517_p0 = pnand %p516_p13, %p510_p10 }
  0x40   :  { %393 = vmatprep.subr.bf16.mxu1 %v544_v0 }
  0x42   :  { %374 = vmatpush3.bf16.msra.mxu0 %v421_v3 }
  0x43   :  { %375 = vmatprep.subr.bf16.mxu0 %v544_v0  ;;  %394 = vmatpush3.bf16.msra.mxu1 %v429_v14 }
  0x44   :  { %395 = vmatprep.subr.bf16.mxu1 %v544_v0 }
  0x46   :  { %376 = vmatpush3.bf16.msra.mxu0 %v422_v4 }
  0x47   :  { %377 = vmatprep.subr.bf16.mxu0 %v544_v0  ;;  %396 = vmatpush3.bf16.msra.mxu1 %v430_v15 }
  0x48   :  { %397 = vmatprep.subr.bf16.mxu1 %v544_v0 }
  0x4a   :  { %378 = vmatpush3.bf16.msra.mxu0 %v423_v5 }
  0x4b   :  { %379 = vmatprep.subr.bf16.mxu0 %v544_v0  ;;  %398 = vmatpush3.bf16.msra.mxu1 %v431_v16 }
  0x4c   :  { %399 = vmatprep.subr.bf16.mxu1 %v544_v0 }
  0x4e   :  { %380 = vmatpush3.bf16.msra.mxu0 %v424_v6 }
  0x4f   :  { %381 = vmatprep.subr.bf16.mxu0 %v544_v0  ;;  %400 = vmatpush3.bf16.msra.mxu1 %v432_v17 }
  0x50   :  { %401 = vmatprep.subr.bf16.mxu1 %v544_v0 }
  0x52   :  { %382 = vmatpush3.bf16.msra.mxu0 %v425_v7 }
  0x53   :  { %383 = vmatprep.subr.bf16.mxu0 %v544_v0  ;;  %402 = vmatpush3.bf16.msra.mxu1 %v433_v18 }
  0x54   :  { %403 = vmatprep.subr.bf16.mxu1 %v544_v0 }
  0x56   :  { %384 = vmatpush3.bf16.msra.mxu0 %v426_v8 }
  0x57   :  { %404 = vmatpush3.bf16.msra.mxu1 %v434_v19 }
  0x59   :  { %386 = vmatmul.mubr.bf16.vlgmr.msra.gmra.mrb[0].mxu0 %v69_v11 }
 0x12c   :  { %v175_v21 = vpop.f32.mrb[0].mxu0 }
 0x12d   :  { %v176_v22 = vadd.f32 %v331_v20, %v175_v21  ;;  %v387_v23 = vpop.f32.mrb[1].mxu0 }
 0x12e   :  { %v178_v24 = vpop.f32.mrb[2].mxu0 }
 0x12f   :  { %v340_v25 = vmul.f32 -1.442695, %v176_v22  ;;  %v179_v26 = vadd.f32 %v331_v20, %v178_v24  ;;  %v388_v27 = vpop.f32.mrb[3].mxu0 }
 0x131   :  { %435 = vpow2.f32 %v340_v25  ;;  %v341_v28 = vmul.f32 -1.442695, %v179_v26 }
 0x133   :  { %437 = vpow2.f32 %v341_v28 }
 0x13b   :  { %v436_v29 = vpop.eup %435 }
 0x13c   :  { %v188_v30 = vadd.f32 1.0, %v436_v29 }
 0x13d   :  { %v438_v31 = vpop.eup %437 }
 0x13e   :  { %439 = vrcp.f32 %v188_v30  ;;  %v189_v32 = vadd.f32 1.0, %v438_v31 }
 0x140   :  { %441 = vrcp.f32 %v189_v32 }
 0x148   :  { %v440_v33 = vpop.eup %439 }
 0x149   :  { %v194_v35 = vmul.f32 %v440_v33, %v176_v22 }
 0x14a   :  { %v442_v34 = vpop.eup %441 }
 0x14b   :  { %v195_v36 = vmul.f32 %v442_v34, %v179_v26 }
 0x14d   :  { %v196_v37 = vpack.c.bf16 %v195_v36, %v194_v35 }
 0x14f   :  { %406 = vmatmul.mubr.bf16.vlgmr.msra.gmra.mrb[0].mxu1 %v196_v37 }
 0x222   :  { %v304_v39 = vpop.f32.mrb[0].mxu1 }
 0x223   :  { %v305_v40 = vadd.f32 %v342_v38, %v304_v39  ;;  %v407_v41 = vpop.f32.mrb[1].mxu1 }
 0x224   :  { %v307_v42 = vpop.f32.mrb[2].mxu1 }
 0x225   :  { %311 = vst [vmem:[#allocation9] sm:$0xff] %v305_v40  ;;  %v308_v43 = vadd.f32 %v342_v38, %v307_v42  ;;  %v408_v44 = vpop.f32.mrb[3].mxu1 }
 0x227   :  { %312 = vst [vmem:[#allocation9 + $0x8] sm:$0xff] %v308_v43 }
 0x228   :  { %520 = shalt.err (!%p517_p0)
}
 0x229   :  { %s521_s12 = scalar_lea.hbm %s648_s5, 256 }
 0x22a   :  { %p522_p1 = scmp.ne.s32.totalorder %s648_s5, %s521_s12  ;;  %p525_p2 = scmp.lt.u32.totalorder %s521_s12, %s648_s5 }
 0x22c   :  { %p527_p3 = pnand %p525_p2, %p522_p1 }
 0x22e   :  { %530 = shalt.err (!%p527_p3)
}
 0x22f   :  { %324 = dma.vmem_to_hbm [thread:$0]  %s319_s9, 256, %s648_s5, [#allocation5], %s541_s1, %s541_s1, %s542_s17  }
 0x230   :  { %535 = dma.done.wait [#allocation5], 256  }
 0x231   :  { %536 = vsyncadd [#allocation5], 4294967040 }
 0x232   :  { %328 = vsyncpa [#allocation4], 1 }
 0x233   :  { %329 = vsyncpa [#allocation7], 1 }
 0x234   :  { %330 = vsyncpa [#allocation5], 1 }

</bundles_post_ra>
